<compile_context>
chip_gen: v7x
topology: tpu7x:2x2x1
jax: 0.10.0
libtpu: 0.0.40
codegen_flags: <defaults>
</compile_context>

<pallas_src>
import functools

import numpy as np

import jax
import jax.numpy as jnp
from jax import lax
from jax.experimental import pallas as pl
from jax.experimental.pallas import tpu as pltpu


# ----------------------------------------------------------------------------
# Fused kernel: one batch element per grid step, activations as (C, H*W).
# ----------------------------------------------------------------------------
def _se_res_block_kernel(x_ref, mask_ref, w1_ref, b1_ref, w2_ref, b2_ref,
                         wse1_ref, bse1_ref, wse2_ref, bse2_ref,
                         o_ref, col_ref, *, H, W, K):
    HW = H * W
    C = x_ref.shape[1]
    pad = K // 2

    x = x_ref[0].astype(jnp.float32)        # (C, HW)   lane-dense activation
    masks = mask_ref[...]                   # (K*K, HW) 0/1 border-validity

    def conv_same(a, w_ref, b_ref):
        # im2col: K*K rolled (+ masked) copies of `a` stacked into col_ref,
        # then a single MXU matmul against the repacked (C, K*K*C) weight.
        for kh in range(K):
            for kw in range(K):
                t = kh * K + kw
                d = (kh - pad) * W + (kw - pad)        # flattened spatial shift
                if d == 0:
                    tap = a                            # centre tap: always valid
                else:
                    tap = pltpu.roll(a, (-d) % HW, axis=1) * masks[t:t + 1, :]
                col_ref[t * C:(t + 1) * C, :] = tap
        acc = jnp.dot(w_ref[...], col_ref[...],
                      preferred_element_type=jnp.float32)   # (C, HW)
        return acc + b_ref[...]                             # bias is (C, 1)

    h = jnp.maximum(conv_same(x, w1_ref, b1_ref), 0.0)      # conv1 + ReLU
    h = conv_same(h, w2_ref, b2_ref)                        # conv2

    # ---- SELayer: global avg-pool -> 1x1 -> ReLU -> 1x1 -> sigmoid -> scale
    y = jnp.mean(h, axis=1, keepdims=True)                              # (C, 1)
    z = jnp.maximum(
        jnp.sum(wse1_ref[...] * y, axis=0, keepdims=True) + bse1_ref[...],
        0.0)                                                            # (1, C/r)
    s = jax.nn.sigmoid(
        jnp.sum(wse2_ref[...] * z, axis=1, keepdims=True) + bse2_ref[...])  # (C, 1)

    # channel scale + residual, f32 math, cast only at the final (dense) store
    o_ref[0] = (h * s + x).astype(o_ref.dtype)


# ----------------------------------------------------------------------------
# Wrapper: public interface is NCHW like the PyTorch module.
# ----------------------------------------------------------------------------
@jax.jit
def se_res_block(x_nchw, params):
    N, C, H, W = x_nchw.shape
    K = params["w_conv1"].shape[0]
    Cr = params["w_se1"].shape[1]
    HW = H * W
    pad = K // 2

    # One-off host-side repack of the (tiny) parameters into the kernel layout.
    def conv_weight_mat(w_hwio):            # (K,K,Cin,Cout) -> (Cout, K*K*Cin)
        return jnp.transpose(w_hwio, (3, 0, 1, 2)).reshape(C, K * K * C)

    w1 = conv_weight_mat(params["w_conv1"])
    w2 = conv_weight_mat(params["w_conv2"])
    b1 = params["b_conv1"].reshape(C, 1)
    b2 = params["b_conv2"].reshape(C, 1)
    wse1 = params["w_se1"]                           # (C, Cr)
    bse1 = params["b_se1"].reshape(1, Cr)
    wse2 = jnp.transpose(params["w_se2"])            # (Cr, C) -> (C, Cr)
    bse2 = params["b_se2"].reshape(C, 1)

    # Static 0/1 border-validity masks for each of the K*K taps (host, numpy).
    hh, ww = np.meshgrid(np.arange(H), np.arange(W), indexing="ij")
    masks = np.stack([
        ((hh + (kh - pad) >= 0) & (hh + (kh - pad) < H) &
         (ww + (kw - pad) >= 0) & (ww + (kw - pad) < W)).reshape(HW)
        for kh in range(K) for kw in range(K)]).astype(np.float32)
    masks = jnp.asarray(masks)                       # (K*K, HW)

    x_flat = x_nchw.reshape(N, C, HW)                # free: merges minor dims

    kernel = functools.partial(_se_res_block_kernel, H=H, W=W, K=K)
    out = pl.pallas_call(
        kernel,
        out_shape=jax.ShapeDtypeStruct((N, C, HW), x_nchw.dtype),
        grid=(N,),
        in_specs=[
            pl.BlockSpec((1, C, HW), lambda n: (n, 0, 0)),      # x (per image)
            pl.BlockSpec((K * K, HW), lambda n: (0, 0)),        # border masks
            pl.BlockSpec((C, K * K * C), lambda n: (0, 0)),     # conv1 weight
            pl.BlockSpec((C, 1), lambda n: (0, 0)),             # conv1 bias
            pl.BlockSpec((C, K * K * C), lambda n: (0, 0)),     # conv2 weight
            pl.BlockSpec((C, 1), lambda n: (0, 0)),             # conv2 bias
            pl.BlockSpec((C, Cr), lambda n: (0, 0)),            # SE w1
            pl.BlockSpec((1, Cr), lambda n: (0, 0)),            # SE b1
            pl.BlockSpec((C, Cr), lambda n: (0, 0)),            # SE w2^T
            pl.BlockSpec((C, 1), lambda n: (0, 0)),             # SE b2
        ],
        out_specs=pl.BlockSpec((1, C, HW), lambda n: (n, 0, 0)),
        scratch_shapes=[pltpu.VMEM((K * K * C, HW), jnp.float32)],  # im2col
        compiler_params=pltpu.CompilerParams(
            dimension_semantics=("parallel",),       # v7x: 2 TCs split the batch
            vmem_limit_bytes=32 * 1024 * 1024),
    )(x_flat, masks, w1, b1, w2, b2, wse1, bse1, wse2, bse2)
    return out.reshape(N, C, H, W)                   # free: splits minor dim


# ----------------------------------------------------------------------------
# Pure-JAX reference (same math) for a correctness sanity check.
# ----------------------------------------------------------------------------
def se_res_block_ref(x_nchw, params):
    x = jnp.transpose(x_nchw, (0, 2, 3, 1))
    dn = ("NHWC", "HWIO", "NHWC")

    def conv(h, w, b):
        return lax.conv_general_dilated(h, w, (1, 1), "SAME",
                                        dimension_numbers=dn) + b[None, None, None, :]

    h = jax.nn.relu(conv(x, params["w_conv1"], params["b_conv1"]))
    h = conv(h, params["w_conv2"], params["b_conv2"])
    y = jnp.mean(h, axis=(1, 2))                                 # (N, C)
    z1 = jax.nn.relu(y @ params["w_se1"] + params["b_se1"])
    z2 = jax.nn.sigmoid(z1 @ params["w_se2"] + params["b_se2"])
    out = h * z2[:, None, None, :] + x
    return jnp.transpose(out, (0, 3, 1, 2))


if __name__ == "__main__":
    # Small shapes consistent with the module: n_feat=16, kernel_size=3, reduction=4.
    N, C, H, W = 2, 16, 16, 16
    K, RED = 3, 4
    Cr = C // RED

    key = jax.random.PRNGKey(0)
    ks = jax.random.split(key, 9)
    params = {
        "w_conv1": 0.1 * jax.random.normal(ks[0], (K, K, C, C), jnp.float32),
        "b_conv1": 0.1 * jax.random.normal(ks[1], (C,), jnp.float32),
        "w_conv2": 0.1 * jax.random.normal(ks[2], (K, K, C, C), jnp.float32),
        "b_conv2": 0.1 * jax.random.normal(ks[3], (C,), jnp.float32),
        "w_se1": 0.1 * jax.random.normal(ks[4], (C, Cr), jnp.float32),
        "b_se1": 0.1 * jax.random.normal(ks[5], (Cr,), jnp.float32),
        "w_se2": 0.1 * jax.random.normal(ks[6], (Cr, C), jnp.float32),
        "b_se2": 0.1 * jax.random.normal(ks[7], (C,), jnp.float32),
    }
    x = jax.random.normal(ks[8], (N, C, H, W), jnp.float32)

    out = jax.block_until_ready(se_res_block(x, params))
    ref = jax.block_until_ready(se_res_block_ref(x, params))

    assert out.shape == (N, C, H, W)
    assert jnp.allclose(out, ref, atol=2e-4, rtol=2e-4), "mismatch vs JAX reference"
    print("KERNEL_OK")
</pallas_src>

<mosaic_0001>
module attributes {stable_mosaic.version = 11 : i64} {
  func.func @_se_res_block_kernel(%arg0: i32, %arg1: memref<1x16x256xf32, #tpu.memory_space<vmem>>, %arg2: memref<9x256xf32, #tpu.memory_space<vmem>>, %arg3: memref<16x144xf32, #tpu.memory_space<vmem>>, %arg4: memref<16x1xf32, #tpu.memory_space<vmem>>, %arg5: memref<16x144xf32, #tpu.memory_space<vmem>>, %arg6: memref<16x1xf32, #tpu.memory_space<vmem>>, %arg7: memref<16x4xf32, #tpu.memory_space<vmem>>, %arg8: memref<1x4xf32, #tpu.memory_space<vmem>>, %arg9: memref<16x4xf32, #tpu.memory_space<vmem>>, %arg10: memref<16x1xf32, #tpu.memory_space<vmem>>, %arg11: memref<1x16x256xf32, #tpu.memory_space<vmem>>, %arg12: memref<144x256xf32, #tpu.memory_space<vmem>>) attributes {dimension_semantics = [#tpu.dimension_semantics<parallel>], iteration_bounds = array<i64: 2>, scalar_prefetch = 0 : i64, scratch_operands = 1 : i64, tpu.core_type = #tpu.core_type<tc>, window_params = [{transform_indices = @transform_0, window_bounds = array<i64: 1, 16, 256>}, {pipeline_mode = #tpu.pipeline_mode<synchronous>, transform_indices = @transform_1, window_bounds = array<i64: 9, 256>}, {pipeline_mode = #tpu.pipeline_mode<synchronous>, transform_indices = @transform_2, window_bounds = array<i64: 16, 144>}, {pipeline_mode = #tpu.pipeline_mode<synchronous>, transform_indices = @transform_3, window_bounds = array<i64: 16, 1>}, {pipeline_mode = #tpu.pipeline_mode<synchronous>, transform_indices = @transform_4, window_bounds = array<i64: 16, 144>}, {pipeline_mode = #tpu.pipeline_mode<synchronous>, transform_indices = @transform_5, window_bounds = array<i64: 16, 1>}, {pipeline_mode = #tpu.pipeline_mode<synchronous>, transform_indices = @transform_6, window_bounds = array<i64: 16, 4>}, {pipeline_mode = #tpu.pipeline_mode<synchronous>, transform_indices = @transform_7, window_bounds = array<i64: 1, 4>}, {pipeline_mode = #tpu.pipeline_mode<synchronous>, transform_indices = @transform_8, window_bounds = array<i64: 16, 4>}, {pipeline_mode = #tpu.pipeline_mode<synchronous>, transform_indices = @transform_9, window_bounds = array<i64: 16, 1>}, {transform_indices = @transform_10, window_bounds = array<i64: 1, 16, 256>}]} {
    %c0 = arith.constant 0 : index
    %c0_0 = arith.constant 0 : index
    %c0_1 = arith.constant 0 : index
    %0 = vector.load %arg1[%c0, %c0_0, %c0_1] : memref<1x16x256xf32, #tpu.memory_space<vmem>>, vector<1x16x256xf32>
    %1 = vector.shape_cast %0 : vector<1x16x256xf32> to vector<16x256xf32>
    %c0_2 = arith.constant 0 : index
    %c0_3 = arith.constant 0 : index
    %2 = vector.load %arg2[%c0_2, %c0_3] : memref<9x256xf32, #tpu.memory_space<vmem>>, vector<9x256xf32>
    %c17_i32 = arith.constant 17 : i32
    %3 = tpu.dynamic_rotate %1 by %c17_i32 dim 1 : vector<16x256xf32>, i32 -> vector<16x256xf32>
    %4 = vector.extract_strided_slice %2 {offsets = [0, 0], sizes = [1, 256], strides = [1, 1]} : vector<9x256xf32> to vector<1x256xf32>
    %5 = vector.broadcast %4 : vector<1x256xf32> to vector<16x256xf32>
    %6 = arith.mulf %3, %5 : vector<16x256xf32>
    %c0_4 = arith.constant 0 : index
    %c0_5 = arith.constant 0 : index
    %7 = vector.load %arg12[%c0_4, %c0_5] : memref<144x256xf32, #tpu.memory_space<vmem>>, vector<16x256xf32>
    tpu.vector_store %arg12[%c0_4, %c0_5], %6 {strides = array<i32>} : memref<144x256xf32, #tpu.memory_space<vmem>>, vector<16x256xf32>,
    %c16_i32 = arith.constant 16 : i32
    %8 = tpu.dynamic_rotate %1 by %c16_i32 dim 1 : vector<16x256xf32>, i32 -> vector<16x256xf32>
    %9 = vector.extract_strided_slice %2 {offsets = [1, 0], sizes = [1, 256], strides = [1, 1]} : vector<9x256xf32> to vector<1x256xf32>
    %10 = vector.broadcast %9 : vector<1x256xf32> to vector<16x256xf32>
    %11 = arith.mulf %8, %10 : vector<16x256xf32>
    %c16 = arith.constant 16 : index
    %c0_6 = arith.constant 0 : index
    %12 = vector.load %arg12[%c16, %c0_6] : memref<144x256xf32, #tpu.memory_space<vmem>>, vector<16x256xf32>
    tpu.vector_store %arg12[%c16, %c0_6], %11 {strides = array<i32>} : memref<144x256xf32, #tpu.memory_space<vmem>>, vector<16x256xf32>,
    %c15_i32 = arith.constant 15 : i32
    %13 = tpu.dynamic_rotate %1 by %c15_i32 dim 1 : vector<16x256xf32>, i32 -> vector<16x256xf32>
    %14 = vector.extract_strided_slice %2 {offsets = [2, 0], sizes = [1, 256], strides = [1, 1]} : vector<9x256xf32> to vector<1x256xf32>
    %15 = vector.broadcast %14 : vector<1x256xf32> to vector<16x256xf32>
    %16 = arith.mulf %13, %15 : vector<16x256xf32>
    %c32 = arith.constant 32 : index
    %c0_7 = arith.constant 0 : index
    %17 = vector.load %arg12[%c32, %c0_7] : memref<144x256xf32, #tpu.memory_space<vmem>>, vector<16x256xf32>
    tpu.vector_store %arg12[%c32, %c0_7], %16 {strides = array<i32>} : memref<144x256xf32, #tpu.memory_space<vmem>>, vector<16x256xf32>,
    %c1_i32 = arith.constant 1 : i32
    %18 = tpu.dynamic_rotate %1 by %c1_i32 dim 1 : vector<16x256xf32>, i32 -> vector<16x256xf32>
    %19 = vector.extract_strided_slice %2 {offsets = [3, 0], sizes = [1, 256], strides = [1, 1]} : vector<9x256xf32> to vector<1x256xf32>
    %20 = vector.broadcast %19 : vector<1x256xf32> to vector<16x256xf32>
    %21 = arith.mulf %18, %20 : vector<16x256xf32>
    %c48 = arith.constant 48 : index
    %c0_8 = arith.constant 0 : index
    %22 = vector.load %arg12[%c48, %c0_8] : memref<144x256xf32, #tpu.memory_space<vmem>>, vector<16x256xf32>
    tpu.vector_store %arg12[%c48, %c0_8], %21 {strides = array<i32>} : memref<144x256xf32, #tpu.memory_space<vmem>>, vector<16x256xf32>,
    %c64 = arith.constant 64 : index
    %c0_9 = arith.constant 0 : index
    %23 = vector.load %arg12[%c64, %c0_9] : memref<144x256xf32, #tpu.memory_space<vmem>>, vector<16x256xf32>
    tpu.vector_store %arg12[%c64, %c0_9], %1 {strides = array<i32>} : memref<144x256xf32, #tpu.memory_space<vmem>>, vector<16x256xf32>,
    %c255_i32 = arith.constant 255 : i32
    %24 = tpu.dynamic_rotate %1 by %c255_i32 dim 1 : vector<16x256xf32>, i32 -> vector<16x256xf32>
    %25 = vector.extract_strided_slice %2 {offsets = [5, 0], sizes = [1, 256], strides = [1, 1]} : vector<9x256xf32> to vector<1x256xf32>
    %26 = vector.broadcast %25 : vector<1x256xf32> to vector<16x256xf32>
    %27 = arith.mulf %24, %26 : vector<16x256xf32>
    %c80 = arith.constant 80 : index
    %c0_10 = arith.constant 0 : index
    %28 = vector.load %arg12[%c80, %c0_10] : memref<144x256xf32, #tpu.memory_space<vmem>>, vector<16x256xf32>
    tpu.vector_store %arg12[%c80, %c0_10], %27 {strides = array<i32>} : memref<144x256xf32, #tpu.memory_space<vmem>>, vector<16x256xf32>,
    %c241_i32 = arith.constant 241 : i32
    %29 = tpu.dynamic_rotate %1 by %c241_i32 dim 1 : vector<16x256xf32>, i32 -> vector<16x256xf32>
    %30 = vector.extract_strided_slice %2 {offsets = [6, 0], sizes = [1, 256], strides = [1, 1]} : vector<9x256xf32> to vector<1x256xf32>
    %31 = vector.broadcast %30 : vector<1x256xf32> to vector<16x256xf32>
    %32 = arith.mulf %29, %31 : vector<16x256xf32>
    %c96 = arith.constant 96 : index
    %c0_11 = arith.constant 0 : index
    %33 = vector.load %arg12[%c96, %c0_11] : memref<144x256xf32, #tpu.memory_space<vmem>>, vector<16x256xf32>
    tpu.vector_store %arg12[%c96, %c0_11], %32 {strides = array<i32>} : memref<144x256xf32, #tpu.memory_space<vmem>>, vector<16x256xf32>,
    %c240_i32 = arith.constant 240 : i32
    %34 = tpu.dynamic_rotate %1 by %c240_i32 dim 1 : vector<16x256xf32>, i32 -> vector<16x256xf32>
    %35 = vector.extract_strided_slice %2 {offsets = [7, 0], sizes = [1, 256], strides = [1, 1]} : vector<9x256xf32> to vector<1x256xf32>
    %36 = vector.broadcast %35 : vector<1x256xf32> to vector<16x256xf32>
    %37 = arith.mulf %34, %36 : vector<16x256xf32>
    %c112 = arith.constant 112 : index
    %c0_12 = arith.constant 0 : index
    %38 = vector.load %arg12[%c112, %c0_12] : memref<144x256xf32, #tpu.memory_space<vmem>>, vector<16x256xf32>
    tpu.vector_store %arg12[%c112, %c0_12], %37 {strides = array<i32>} : memref<144x256xf32, #tpu.memory_space<vmem>>, vector<16x256xf32>,
    %c239_i32 = arith.constant 239 : i32
    %39 = tpu.dynamic_rotate %1 by %c239_i32 dim 1 : vector<16x256xf32>, i32 -> vector<16x256xf32>
    %40 = vector.extract_strided_slice %2 {offsets = [8, 0], sizes = [1, 256], strides = [1, 1]} : vector<9x256xf32> to vector<1x256xf32>
    %41 = vector.broadcast %40 : vector<1x256xf32> to vector<16x256xf32>
    %42 = arith.mulf %39, %41 : vector<16x256xf32>
    %c128 = arith.constant 128 : index
    %c0_13 = arith.constant 0 : index
    %43 = vector.load %arg12[%c128, %c0_13] : memref<144x256xf32, #tpu.memory_space<vmem>>, vector<16x256xf32>
    tpu.vector_store %arg12[%c128, %c0_13], %42 {strides = array<i32>} : memref<144x256xf32, #tpu.memory_space<vmem>>, vector<16x256xf32>,
    %c0_14 = arith.constant 0 : index
    %c0_15 = arith.constant 0 : index
    %44 = vector.load %arg3[%c0_14, %c0_15] : memref<16x144xf32, #tpu.memory_space<vmem>>, vector<16x144xf32>
    %c0_16 = arith.constant 0 : index
    %c0_17 = arith.constant 0 : index
    %45 = vector.load %arg12[%c0_16, %c0_17] : memref<144x256xf32, #tpu.memory_space<vmem>>, vector<144x256xf32>
    %cst = arith.constant dense<0.000000e+00> : vector<16x256xf32>
    %46 = tpu.matmul %44, %45, %cst {dimension_numbers = #tpu.dot_dimension_numbers<[1], [0], [0], [1], [0, 0, 1, 1], [], []>} : vector<16x144xf32>, vector<144x256xf32>, vector<16x256xf32> -> vector<16x256xf32>
    %c0_18 = arith.constant 0 : index
    %c0_19 = arith.constant 0 : index
    %47 = vector.load %arg4[%c0_18, %c0_19] : memref<16x1xf32, #tpu.memory_space<vmem>>, vector<16x1xf32>
    %48 = vector.broadcast %47 : vector<16x1xf32> to vector<16x256xf32>
    %49 = arith.addf %46, %48 : vector<16x256xf32>
    %cst_20 = arith.constant 0.000000e+00 : f32
    %50 = vector.broadcast %cst_20 : f32 to vector<16x256xf32>
    %51 = arith.maximumf %49, %50 : vector<16x256xf32>
    %c17_i32_21 = arith.constant 17 : i32
    %52 = tpu.dynamic_rotate %51 by %c17_i32_21 dim 1 : vector<16x256xf32>, i32 -> vector<16x256xf32>
    %53 = vector.extract_strided_slice %2 {offsets = [0, 0], sizes = [1, 256], strides = [1, 1]} : vector<9x256xf32> to vector<1x256xf32>
    %54 = vector.broadcast %53 : vector<1x256xf32> to vector<16x256xf32>
    %55 = arith.mulf %52, %54 : vector<16x256xf32>
    %c0_22 = arith.constant 0 : index
    %c0_23 = arith.constant 0 : index
    %56 = vector.load %arg12[%c0_22, %c0_23] : memref<144x256xf32, #tpu.memory_space<vmem>>, vector<16x256xf32>
    tpu.vector_store %arg12[%c0_22, %c0_23], %55 {strides = array<i32>} : memref<144x256xf32, #tpu.memory_space<vmem>>, vector<16x256xf32>,
    %c16_i32_24 = arith.constant 16 : i32
    %57 = tpu.dynamic_rotate %51 by %c16_i32_24 dim 1 : vector<16x256xf32>, i32 -> vector<16x256xf32>
    %58 = vector.extract_strided_slice %2 {offsets = [1, 0], sizes = [1, 256], strides = [1, 1]} : vector<9x256xf32> to vector<1x256xf32>
    %59 = vector.broadcast %58 : vector<1x256xf32> to vector<16x256xf32>
    %60 = arith.mulf %57, %59 : vector<16x256xf32>
    %c16_25 = arith.constant 16 : index
    %c0_26 = arith.constant 0 : index
    %61 = vector.load %arg12[%c16_25, %c0_26] : memref<144x256xf32, #tpu.memory_space<vmem>>, vector<16x256xf32>
    tpu.vector_store %arg12[%c16_25, %c0_26], %60 {strides = array<i32>} : memref<144x256xf32, #tpu.memory_space<vmem>>, vector<16x256xf32>,
    %c15_i32_27 = arith.constant 15 : i32
    %62 = tpu.dynamic_rotate %51 by %c15_i32_27 dim 1 : vector<16x256xf32>, i32 -> vector<16x256xf32>
    %63 = vector.extract_strided_slice %2 {offsets = [2, 0], sizes = [1, 256], strides = [1, 1]} : vector<9x256xf32> to vector<1x256xf32>
    %64 = vector.broadcast %63 : vector<1x256xf32> to vector<16x256xf32>
    %65 = arith.mulf %62, %64 : vector<16x256xf32>
    %c32_28 = arith.constant 32 : index
    %c0_29 = arith.constant 0 : index
    %66 = vector.load %arg12[%c32_28, %c0_29] : memref<144x256xf32, #tpu.memory_space<vmem>>, vector<16x256xf32>
    tpu.vector_store %arg12[%c32_28, %c0_29], %65 {strides = array<i32>} : memref<144x256xf32, #tpu.memory_space<vmem>>, vector<16x256xf32>,
    %c1_i32_30 = arith.constant 1 : i32
    %67 = tpu.dynamic_rotate %51 by %c1_i32_30 dim 1 : vector<16x256xf32>, i32 -> vector<16x256xf32>
    %68 = vector.extract_strided_slice %2 {offsets = [3, 0], sizes = [1, 256], strides = [1, 1]} : vector<9x256xf32> to vector<1x256xf32>
    %69 = vector.broadcast %68 : vector<1x256xf32> to vector<16x256xf32>
    %70 = arith.mulf %67, %69 : vector<16x256xf32>
    %c48_31 = arith.constant 48 : index
    %c0_32 = arith.constant 0 : index
    %71 = vector.load %arg12[%c48_31, %c0_32] : memref<144x256xf32, #tpu.memory_space<vmem>>, vector<16x256xf32>
    tpu.vector_store %arg12[%c48_31, %c0_32], %70 {strides = array<i32>} : memref<144x256xf32, #tpu.memory_space<vmem>>, vector<16x256xf32>,
    %c64_33 = arith.constant 64 : index
    %c0_34 = arith.constant 0 : index
    %72 = vector.load %arg12[%c64_33, %c0_34] : memref<144x256xf32, #tpu.memory_space<vmem>>, vector<16x256xf32>
    tpu.vector_store %arg12[%c64_33, %c0_34], %51 {strides = array<i32>} : memref<144x256xf32, #tpu.memory_space<vmem>>, vector<16x256xf32>,
    %c255_i32_35 = arith.constant 255 : i32
    %73 = tpu.dynamic_rotate %51 by %c255_i32_35 dim 1 : vector<16x256xf32>, i32 -> vector<16x256xf32>
    %74 = vector.extract_strided_slice %2 {offsets = [5, 0], sizes = [1, 256], strides = [1, 1]} : vector<9x256xf32> to vector<1x256xf32>
    %75 = vector.broadcast %74 : vector<1x256xf32> to vector<16x256xf32>
    %76 = arith.mulf %73, %75 : vector<16x256xf32>
    %c80_36 = arith.constant 80 : index
    %c0_37 = arith.constant 0 : index
    %77 = vector.load %arg12[%c80_36, %c0_37] : memref<144x256xf32, #tpu.memory_space<vmem>>, vector<16x256xf32>
    tpu.vector_store %arg12[%c80_36, %c0_37], %76 {strides = array<i32>} : memref<144x256xf32, #tpu.memory_space<vmem>>, vector<16x256xf32>,
    %c241_i32_38 = arith.constant 241 : i32
    %78 = tpu.dynamic_rotate %51 by %c241_i32_38 dim 1 : vector<16x256xf32>, i32 -> vector<16x256xf32>
    %79 = vector.extract_strided_slice %2 {offsets = [6, 0], sizes = [1, 256], strides = [1, 1]} : vector<9x256xf32> to vector<1x256xf32>
    %80 = vector.broadcast %79 : vector<1x256xf32> to vector<16x256xf32>
    %81 = arith.mulf %78, %80 : vector<16x256xf32>
    %c96_39 = arith.constant 96 : index
    %c0_40 = arith.constant 0 : index
    %82 = vector.load %arg12[%c96_39, %c0_40] : memref<144x256xf32, #tpu.memory_space<vmem>>, vector<16x256xf32>
    tpu.vector_store %arg12[%c96_39, %c0_40], %81 {strides = array<i32>} : memref<144x256xf32, #tpu.memory_space<vmem>>, vector<16x256xf32>,
    %c240_i32_41 = arith.constant 240 : i32
    %83 = tpu.dynamic_rotate %51 by %c240_i32_41 dim 1 : vector<16x256xf32>, i32 -> vector<16x256xf32>
    %84 = vector.extract_strided_slice %2 {offsets = [7, 0], sizes = [1, 256], strides = [1, 1]} : vector<9x256xf32> to vector<1x256xf32>
    %85 = vector.broadcast %84 : vector<1x256xf32> to vector<16x256xf32>
    %86 = arith.mulf %83, %85 : vector<16x256xf32>
    %c112_42 = arith.constant 112 : index
    %c0_43 = arith.constant 0 : index
    %87 = vector.load %arg12[%c112_42, %c0_43] : memref<144x256xf32, #tpu.memory_space<vmem>>, vector<16x256xf32>
    tpu.vector_store %arg12[%c112_42, %c0_43], %86 {strides = array<i32>} : memref<144x256xf32, #tpu.memory_space<vmem>>, vector<16x256xf32>,
    %c239_i32_44 = arith.constant 239 : i32
    %88 = tpu.dynamic_rotate %51 by %c239_i32_44 dim 1 : vector<16x256xf32>, i32 -> vector<16x256xf32>
    %89 = vector.extract_strided_slice %2 {offsets = [8, 0], sizes = [1, 256], strides = [1, 1]} : vector<9x256xf32> to vector<1x256xf32>
    %90 = vector.broadcast %89 : vector<1x256xf32> to vector<16x256xf32>
    %91 = arith.mulf %88, %90 : vector<16x256xf32>
    %c128_45 = arith.constant 128 : index
    %c0_46 = arith.constant 0 : index
    %92 = vector.load %arg12[%c128_45, %c0_46] : memref<144x256xf32, #tpu.memory_space<vmem>>, vector<16x256xf32>
    tpu.vector_store %arg12[%c128_45, %c0_46], %91 {strides = array<i32>} : memref<144x256xf32, #tpu.memory_space<vmem>>, vector<16x256xf32>,
    %c0_47 = arith.constant 0 : index
    %c0_48 = arith.constant 0 : index
    %93 = vector.load %arg5[%c0_47, %c0_48] : memref<16x144xf32, #tpu.memory_space<vmem>>, vector<16x144xf32>
    %c0_49 = arith.constant 0 : index
    %c0_50 = arith.constant 0 : index
    %94 = vector.load %arg12[%c0_49, %c0_50] : memref<144x256xf32, #tpu.memory_space<vmem>>, vector<144x256xf32>
    %cst_51 = arith.constant dense<0.000000e+00> : vector<16x256xf32>
    %95 = tpu.matmul %93, %94, %cst_51 {dimension_numbers = #tpu.dot_dimension_numbers<[1], [0], [0], [1], [0, 0, 1, 1], [], []>} : vector<16x144xf32>, vector<144x256xf32>, vector<16x256xf32> -> vector<16x256xf32>
    %c0_52 = arith.constant 0 : index
    %c0_53 = arith.constant 0 : index
    %96 = vector.load %arg6[%c0_52, %c0_53] : memref<16x1xf32, #tpu.memory_space<vmem>>, vector<16x1xf32>
    %97 = vector.broadcast %96 : vector<16x1xf32> to vector<16x256xf32>
    %98 = arith.addf %95, %97 : vector<16x256xf32>
    %cst_54 = arith.constant dense<0.000000e+00> : vector<16xf32>
    %99 = vector.multi_reduction <add>, %98, %cst_54 [1] : vector<16x256xf32> to vector<16xf32>
    %100 = vector.shape_cast %99 : vector<16xf32> to vector<16x1xf32>
    %cst_55 = arith.constant 2.560000e+02 : f32
    %101 = vector.broadcast %cst_55 : f32 to vector<16x1xf32>
    %102 = arith.divf %100, %101 : vector<16x1xf32>
    %c0_56 = arith.constant 0 : index
    %c0_57 = arith.constant 0 : index
    %103 = vector.load %arg7[%c0_56, %c0_57] : memref<16x4xf32, #tpu.memory_space<vmem>>, vector<16x4xf32>
    %104 = vector.broadcast %102 : vector<16x1xf32> to vector<16x4xf32>
    %105 = arith.mulf %103, %104 : vector<16x4xf32>
    %cst_58 = arith.constant dense<0.000000e+00> : vector<4xf32>
    %106 = vector.multi_reduction <add>, %105, %cst_58 [0] : vector<16x4xf32> to vector<4xf32>
    %107 = vector.shape_cast %106 : vector<4xf32> to vector<1x4xf32>
    %c0_59 = arith.constant 0 : index
    %c0_60 = arith.constant 0 : index
    %108 = vector.load %arg8[%c0_59, %c0_60] : memref<1x4xf32, #tpu.memory_space<vmem>>, vector<1x4xf32>
    %109 = arith.addf %107, %108 : vector<1x4xf32>
    %cst_61 = arith.constant 0.000000e+00 : f32
    %110 = vector.broadcast %cst_61 : f32 to vector<1x4xf32>
    %111 = arith.maximumf %109, %110 : vector<1x4xf32>
    %c0_62 = arith.constant 0 : index
    %c0_63 = arith.constant 0 : index
    %112 = vector.load %arg9[%c0_62, %c0_63] : memref<16x4xf32, #tpu.memory_space<vmem>>, vector<16x4xf32>
    %113 = vector.broadcast %111 : vector<1x4xf32> to vector<16x4xf32>
    %114 = arith.mulf %112, %113 : vector<16x4xf32>
    %cst_64 = arith.constant dense<0.000000e+00> : vector<16xf32>
    %115 = vector.multi_reduction <add>, %114, %cst_64 [1] : vector<16x4xf32> to vector<16xf32>
    %116 = vector.shape_cast %115 : vector<16xf32> to vector<16x1xf32>
    %c0_65 = arith.constant 0 : index
    %c0_66 = arith.constant 0 : index
    %117 = vector.load %arg10[%c0_65, %c0_66] : memref<16x1xf32, #tpu.memory_space<vmem>>, vector<16x1xf32>
    %118 = arith.addf %116, %117 : vector<16x1xf32>
    %119 = arith.negf %118 : vector<16x1xf32>
    %120 = math.exp %119 : vector<16x1xf32>
    %cst_67 = arith.constant 1.000000e+00 : f32
    %121 = vector.broadcast %cst_67 : f32 to vector<16x1xf32>
    %122 = arith.addf %121, %120 : vector<16x1xf32>
    %123 = arith.divf %121, %122 : vector<16x1xf32>
    %124 = vector.broadcast %123 : vector<16x1xf32> to vector<16x256xf32>
    %125 = arith.mulf %98, %124 : vector<16x256xf32>
    %126 = arith.addf %125, %1 : vector<16x256xf32>
    %c0_68 = arith.constant 0 : index
    %c0_69 = arith.constant 0 : index
    %c0_70 = arith.constant 0 : index
    %127 = vector.load %arg11[%c0_68, %c0_69, %c0_70] : memref<1x16x256xf32, #tpu.memory_space<vmem>>, vector<1x16x256xf32>
    %128 = vector.shape_cast %127 : vector<1x16x256xf32> to vector<16x256xf32>
    %129 = vector.shape_cast %126 : vector<16x256xf32> to vector<1x16x256xf32>
    tpu.vector_store %arg11[%c0_68, %c0_69, %c0_70], %129 {strides = array<i32>} : memref<1x16x256xf32, #tpu.memory_space<vmem>>, vector<1x16x256xf32>,
    return
  }
  func.func @transform_0(%arg0: i32) -> (i32, i32, i32) {
    %c0_i32 = arith.constant 0 : i32
    %c0_i32_0 = arith.constant 0 : i32
    %c0_i32_1 = arith.constant 0 : i32
    return %arg0, %c0_i32, %c0_i32_0 : i32, i32, i32
  }
  func.func @transform_1(%arg0: i32) -> (i32, i32) {
    %c0_i32 = arith.constant 0 : i32
    %c0_i32_0 = arith.constant 0 : i32
    %c0_i32_1 = arith.constant 0 : i32
    return %c0_i32, %c0_i32_0 : i32, i32
  }
  func.func @transform_2(%arg0: i32) -> (i32, i32) {
    %c0_i32 = arith.constant 0 : i32
    %c0_i32_0 = arith.constant 0 : i32
    %c0_i32_1 = arith.constant 0 : i32
    return %c0_i32, %c0_i32_0 : i32, i32
  }
  func.func @transform_3(%arg0: i32) -> (i32, i32) {
    %c0_i32 = arith.constant 0 : i32
    %c0_i32_0 = arith.constant 0 : i32
    %c0_i32_1 = arith.constant 0 : i32
    return %c0_i32, %c0_i32_0 : i32, i32
  }
  func.func @transform_4(%arg0: i32) -> (i32, i32) {
    %c0_i32 = arith.constant 0 : i32
    %c0_i32_0 = arith.constant 0 : i32
    %c0_i32_1 = arith.constant 0 : i32
    return %c0_i32, %c0_i32_0 : i32, i32
  }
  func.func @transform_5(%arg0: i32) -> (i32, i32) {
    %c0_i32 = arith.constant 0 : i32
    %c0_i32_0 = arith.constant 0 : i32
    %c0_i32_1 = arith.constant 0 : i32
    return %c0_i32, %c0_i32_0 : i32, i32
  }
  func.func @transform_6(%arg0: i32) -> (i32, i32) {
    %c0_i32 = arith.constant 0 : i32
    %c0_i32_0 = arith.constant 0 : i32
    %c0_i32_1 = arith.constant 0 : i32
    return %c0_i32, %c0_i32_0 : i32, i32
  }
  func.func @transform_7(%arg0: i32) -> (i32, i32) {
    %c0_i32 = arith.constant 0 : i32
    %c0_i32_0 = arith.constant 0 : i32
    %c0_i32_1 = arith.constant 0 : i32
    return %c0_i32, %c0_i32_0 : i32, i32
  }
  func.func @transform_8(%arg0: i32) -> (i32, i32) {
    %c0_i32 = arith.constant 0 : i32
    %c0_i32_0 = arith.constant 0 : i32
    %c0_i32_1 = arith.constant 0 : i32
    return %c0_i32, %c0_i32_0 : i32, i32
  }
  func.func @transform_9(%arg0: i32) -> (i32, i32) {
    %c0_i32 = arith.constant 0 : i32
    %c0_i32_0 = arith.constant 0 : i32
    %c0_i32_1 = arith.constant 0 : i32
    return %c0_i32, %c0_i32_0 : i32, i32
  }
  func.func @transform_10(%arg0: i32) -> (i32, i32, i32) {
    %c0_i32 = arith.constant 0 : i32
    %c0_i32_0 = arith.constant 0 : i32
    %c0_i32_1 = arith.constant 0 : i32
    return %arg0, %c0_i32, %c0_i32_0 : i32, i32, i32
  }
}

</mosaic_0001>

<bundles_post_ra>
// kernel: se_res_block.1
= control target key start
LH: loop header
LB: loop body
LE: loop exit
PB: predicated region body
PF: predicated region fallthrough
CT: control target
= control target key end

     0   :  { %s1370_s13 = smov 0   ;;  %s1931_s0 = inlined_call_operand.vmem [shape: f32[2,16,256], index: 0, kind: input, shape index: {}]   ;;  %s1932_s1 = inlined_call_operand.vmem [shape: f32[9,256], index: 1, kind: input, shape index: {}]   ;;  %s1933_s2 = inlined_call_operand.vmem [shape: f32[16,144], index: 2, kind: input, shape index: {}]   ;;  %s1934_s3 = inlined_call_operand.vmem [shape: f32[16,1], index: 3, kind: input, shape index: {}]   ;;  %s1935_s4 = inlined_call_operand.vmem [shape: f32[16,144], index: 4, kind: input, shape index: {}]   ;;  %s1936_s5 = inlined_call_operand.vmem [shape: f32[16,1], index: 5, kind: input, shape index: {}]   ;;  %s1937_s6 = inlined_call_operand.vmem [shape: f32[16,4], index: 6, kind: input, shape index: {}]   ;;  %s1938_s7 = inlined_call_operand.vmem [shape: f32[1,4], index: 7, kind: input, shape index: {}]   ;;  %s1939_s8 = inlined_call_operand.vmem [shape: f32[16,4], index: 8, kind: input, shape index: {}]   ;;  %s1940_s9 = inlined_call_operand.vmem [shape: f32[16,1], index: 9, kind: input, shape index: {}]   ;;  %s1941_s10 = inlined_call_operand.vmem [shape: f32[2,16,256], index: 10, kind: output, shape index: {}]  }
   0x1 LB: > { %s1178_s14 = sadd.s32 4294967295, %s1304_s13   ;;  %p1182_p0 = scmp.ge.s32.totalorder %s1304_s13, 1  ;;  %s1304_s13 = sphi %s1370_s13, %s20_s13  }
   0x2   : > { %p312_p1 = scmp.lt.s32.totalorder %s1304_s13, 3 }
   0x4   : > { %p313_p2 = pnand %p1182_p0, %p312_p1 }
   0x5   : > { %p350_p3 = scmp.lt.s32.totalorder (!%p313_p2), %s1178_s14, 1  ;;  %s1306_s19 = smov (!%p313_p2), 17   ;;  %v607_v4 = vld [vmem:[%s1933_s2 + $0x8] sm:$0xff] (!%p313_p2)  ;;  %vm658_vm0 = vcmask (!%p313_p2), 130048   ;;  %v1314_v5 = vmov (!%p313_p2), 0   ;;  %v646_v6 = vld [vmem:[%s1934_s3] sm:$0xff] (!%p313_p2)  ;;  %v376_v8 = vlaneseq (!%p313_p2) }
   0x6   : > { %316 = sbr.rel (%p313_p2) target bundleno = 1300 (0x514), region = 60  ;;  %s1307_s20 = smov (!%p313_p2), 16   ;;  %1189 = vmatprep.mubr.msk.f32.mxu0 (!%p313_p2), %vm658_vm0, %v607_v4  ;;  %1288 = vset.pattern.permute.xlu0 (!%p313_p2), %v1314_v5  ;;  %v647_v7 = vld [vmem:[%s1934_s3 + $0x8] sm:$0xff] (!%p313_p2)  ;;  %v1478_v12 = vld [vmem:[%s1932_s1] sm:$0xff] (!%p313_p2)  ;;  %vm1058_vm9 = vcmask (!%p313_p2), 31744  }
   0x7   : > { %s1308_s21 = smov (!%p313_p2), 15   ;;  %s1309_s22 = smov (!%p313_p2), 1   ;;  %1289 = vset.pattern.permute.xlu1 (!%p313_p2), %v1314_v5  ;;  %v1468_v9 = vshrl.u32 (!%p313_p2), %v376_v8, 7  ;;  %v1470_v10 = vand.u32 (!%p313_p2), 127, %v376_v8  ;;  %v1483_v13 = vld [vmem:[%s1932_s1 + $0x8] sm:$0xff] (!%p313_p2) }
   0x8   : > { %s1310_s23 = smov (!%p313_p2), 127   ;;  %s1311_s24 = smov (!%p313_p2), 113  }
   0x9   : > { %s1312_s25 = smov (!%p313_p2), 112   ;;  %s1313_s28 = smov (!%p313_p2), 111   ;;  %v1473_v11 = vsub.s32 (!%p313_p2), 0, %v1468_v9  ;;  %vm378_vm1 = vcmp.lt.s32.totalorder (!%p313_p2), %v1470_v10, 17  ;;  %v414_v24 = vsub.s32 (!%p313_p2), 1, %v1468_v9  ;;  %vm407_vm2 = vcmp.lt.s32.totalorder (!%p313_p2), %v1470_v10, 16 }
   0xa   : > { %v443_v37 = vsub.s32 (!%p313_p2), 2, %v1468_v9  ;;  %vm436_vm3 = vcmp.lt.s32.totalorder (!%p313_p2), %v1470_v10, 15  ;;  %v472_v54 = vsub.s32 (!%p313_p2), 3, %v1468_v9  ;;  %vm465_vm4 = vcmp.lt.s32.totalorder (!%p313_p2), %v1470_v10, 1 }
   0xb   : > { %v1488_v16 = vrot.slane (!%p313_p2), %v1478_v12, %v1473_v11  ;;  %v1492_v17 = vrot.slane (!%p313_p2), %v1483_v13, %v1473_v11  ;;  %v1509_v33 = vrot.slane (!%p313_p2), %v1478_v12, %v414_v24  ;;  %v1512_v34 = vrot.slane (!%p313_p2), %v1483_v13, %v414_v24 }
   0xc   : > { %v1529_v50 = vrot.slane (!%p313_p2), %v1478_v12, %v443_v37  ;;  %v1532_v51 = vrot.slane (!%p313_p2), %v1483_v13, %v443_v37  ;;  %v1552_v8 = vrot.slane (!%p313_p2), %v1483_v13, %v472_v54  ;;  %vm498_vm5 = vcmp.lt.s32.totalorder (!%p313_p2), %v1470_v10, 127 }
   0xd   : > { %s1943_s14 = smov (!%p350_p3, %s1178_s14), 1  ;;  %vm527_vm6 = vcmp.lt.s32.totalorder %v1470_v10, 113  ;;  %vm556_vm7 = vcmp.lt.s32.totalorder %v1470_v10, 112  ;;  %vm585_vm8 = vcmp.lt.s32.totalorder %v1470_v10, 111  ;;  %v913_v10 = vld [vmem:[%s1935_s4 + $0x18] sm:$0xff] }
   0xe   : > { %s1197_s15 = sshll.u32 %s1943_s14, 5 }
   0xf   : > { %s354_s18 = scalar_lea.vmem %s1931_s0, %s1197_s15  ;;  %s359_s12 = scalar_lea.vmem %s1941_s10, %s1197_s15 }
  0x10   : > { %v1386_v0 = vld [vmem:[%s354_s18 + $0x8] sm:$0xff]  ;;  %v1388_v1 = vld [vmem:[%s354_s18] sm:$0xff]  ;;  %v1394_v2 = vld [vmem:[%s354_s18 + $0x18] sm:$0xff] }
  0x11   : > { %372 = vrot.lane.b32.xlu1 %v1386_v0, %s1306_s19  ;;  %368 = vrot.lane.b32.xlu0 %v1388_v1, %s1306_s19  ;;  %v1396_v3 = vld [vmem:[%s354_s18 + $0x10] sm:$0xff] }
  0x15   : > { %374 = vrot.lane.b32.xlu1 %v1394_v2, %s1306_s19  ;;  %370 = vrot.lane.b32.xlu0 %v1396_v3, %s1306_s19 }
  0x19   : > { %401 = vrot.lane.b32.xlu1 %v1396_v3, %s1307_s20  ;;  %399 = vrot.lane.b32.xlu0 %v1388_v1, %s1307_s20 }
  0x1d   : > { %405 = vrot.lane.b32.xlu1 %v1394_v2, %s1307_s20  ;;  %403 = vrot.lane.b32.xlu0 %v1386_v0, %s1307_s20 }
  0x21   : > { %430 = vrot.lane.b32.xlu1 %v1396_v3, %s1308_s21  ;;  %428 = vrot.lane.b32.xlu0 %v1388_v1, %s1308_s21 }
  0x25   : > { %434 = vrot.lane.b32.xlu1 %v1394_v2, %s1308_s21  ;;  %432 = vrot.lane.b32.xlu0 %v1386_v0, %s1308_s21 }
  0x29   : > { %459 = vrot.lane.b32.xlu1 %v1396_v3, %s1309_s22  ;;  %457 = vrot.lane.b32.xlu0 %v1388_v1, %s1309_s22 }
  0x2d   : > { %463 = vrot.lane.b32.xlu1 %v1394_v2, %s1309_s22  ;;  %461 = vrot.lane.b32.xlu0 %v1386_v0, %s1309_s22 }
  0x31   : > { %492 = vrot.lane.b32.xlu1 %v1396_v3, %s1310_s23  ;;  %490 = vrot.lane.b32.xlu0 %v1388_v1, %s1310_s23 }
  0x35   : > { %496 = vrot.lane.b32.xlu1 %v1394_v2, %s1310_s23  ;;  %494 = vrot.lane.b32.xlu0 %v1386_v0, %s1310_s23 }
  0x39   : > { %521 = vrot.lane.b32.xlu1 %v1396_v3, %s1311_s24  ;;  %519 = vrot.lane.b32.xlu0 %v1388_v1, %s1311_s24 }
  0x3d   : > { %525 = vrot.lane.b32.xlu1 %v1394_v2, %s1311_s24  ;;  %523 = vrot.lane.b32.xlu0 %v1386_v0, %s1311_s24 }
  0x41   : > { %550 = vrot.lane.b32.xlu1 %v1396_v3, %s1312_s25  ;;  %548 = vrot.lane.b32.xlu0 %v1388_v1, %s1312_s25 }
  0x45   : > { %554 = vrot.lane.b32.xlu1 %v1394_v2, %s1312_s25  ;;  %552 = vrot.lane.b32.xlu0 %v1386_v0, %s1312_s25 }
  0x49   : > { %579 = vrot.lane.b32.xlu1 %v1396_v3, %s1313_s28  ;;  %577 = vrot.lane.b32.xlu0 %v1388_v1, %s1313_s28 }
  0x4d   : > { %583 = vrot.lane.b32.xlu1 %v1394_v2, %s1313_s28  ;;  %581 = vrot.lane.b32.xlu0 %v1386_v0, %s1313_s28 }
  0x51   : > { %650 = vperm.xlu0 %1288, %v646_v6   ;;  %655 = vperm.xlu1 %1289, %v647_v7   ;;  %v1549_v7 = vrot.slane %v1478_v12, %v472_v54 }
  0x83   : > { %v373_v14 = vpop.permute.xlu1 %372  ;;  %v369_v15 = vpop.permute.xlu0 %368 }
  0x84   : > { %v379_v18 = vsel %vm378_vm1, %v369_v15, %v373_v14  ;;  %v381_v19 = vsel %vm378_vm1, %v373_v14, %v369_v15 }
  0x85   : > { %v391_v25 = vmul.f32 %v1488_v16, %v381_v19  ;;  %v392_v27 = vmul.f32 %v1492_v17, %v379_v18  ;;  %v505_v18 = vsub.s32 5, %v1468_v9 }
  0x87   : > { %v375_v20 = vpop.permute.xlu1 %374  ;;  %v371_v21 = vpop.permute.xlu0 %370 }
  0x88   : > { %v380_v22 = vsel %vm378_vm1, %v371_v21, %v375_v20  ;;  %v382_v23 = vsel %vm378_vm1, %v375_v20, %v371_v21 }
  0x89   : > { %v393_v26 = vmul.f32 %v1488_v16, %v382_v23  ;;  %v394_v28 = vmul.f32 %v1492_v17, %v380_v22 }
  0x8b   : > { %v402_v29 = vpop.permute.xlu1 %401  ;;  %v400_v30 = vpop.permute.xlu0 %399  ;;  %v1199_v31 = vpack.c.bf16 %v394_v28, %v392_v27  ;;  %v1201_v32 = vpack.c.bf16 %v393_v26, %v391_v25 }
  0x8d   : > { %1200 = vmatprep.subr.bf16.mxu0 %v1199_v31  ;;  %v1215_v31 = vpack.c.bf16 %v1394_v2, %v1386_v0 }
  0x8e   : > { %1202 = vmatpush1.bf16.msra.mxu0 %v1201_v32  ;;  %v1571_v32 = vrot.slane %v1478_v12, %v505_v18 }
  0x8f   : > { %v406_v35 = vpop.permute.xlu1 %405  ;;  %v404_v36 = vpop.permute.xlu0 %403 }
  0x90   : > { %v409_v38 = vsel %vm407_vm2, %v402_v29, %v406_v35  ;;  %v411_v39 = vsel %vm407_vm2, %v406_v35, %v402_v29  ;;  %v408_v40 = vsel %vm407_vm2, %v400_v30, %v404_v36  ;;  %v410_v41 = vsel %vm407_vm2, %v404_v36, %v400_v30 }
  0x91   : > { %v422_v42 = vmul.f32 %v1509_v33, %v411_v39  ;;  %v423_v43 = vmul.f32 %v1512_v34, %v409_v38  ;;  %v420_v44 = vmul.f32 %v1509_v33, %v410_v41  ;;  %v421_v45 = vmul.f32 %v1512_v34, %v408_v40 }
  0x92   : > { %v1574_v35 = vrot.slane %v1483_v13, %v505_v18  ;;  %v1217_v36 = vpack.c.bf16 %v1396_v3, %v1388_v1  ;;  %v534_v39 = vsub.s32 6, %v1468_v9 }
  0x93   : > { %v431_v46 = vpop.permute.xlu1 %430  ;;  %v429_v47 = vpop.permute.xlu0 %428  ;;  %v1203_v48 = vpack.c.bf16 %v423_v43, %v421_v45  ;;  %v1205_v49 = vpack.c.bf16 %v422_v42, %v420_v44 }
  0x94   : > { %v1593_v54 = vrot.slane %v1478_v12, %v534_v39 }
  0x95   : > { %1204 = vmatprep.subr.bf16.mxu0 %v1203_v48 }
  0x96   : > { %1206 = vmatpush1.bf16.msra.mxu0 %v1205_v49 }
  0x97   : > { %v435_v52 = vpop.permute.xlu1 %434  ;;  %v433_v53 = vpop.permute.xlu0 %432 }
  0x98   : > { %v438_v55 = vsel %vm436_vm3, %v431_v46, %v435_v52  ;;  %v440_v56 = vsel %vm436_vm3, %v435_v52, %v431_v46  ;;  %v437_v57 = vsel %vm436_vm3, %v429_v47, %v433_v53  ;;  %v439_v58 = vsel %vm436_vm3, %v433_v53, %v429_v47 }
  0x99   : > { %v451_v59 = vmul.f32 %v1529_v50, %v440_v56  ;;  %v452_v60 = vmul.f32 %v1532_v51, %v438_v55  ;;  %v449_v61 = vmul.f32 %v1529_v50, %v439_v58  ;;  %v450_v62 = vmul.f32 %v1532_v51, %v437_v57 }
  0x9a   : > { %v1596_v55 = vrot.slane %v1483_v13, %v534_v39  ;;  %v563_v58 = vsub.s32 7, %v1468_v9 }
  0x9b   : > { %v460_v63 = vpop.permute.xlu1 %459  ;;  %v458_v4 = vpop.permute.xlu0 %457  ;;  %v1207_v5 = vpack.c.bf16 %v452_v60, %v450_v62  ;;  %v1209_v6 = vpack.c.bf16 %v451_v59, %v449_v61 }
  0x9d   : > { %1208 = vmatprep.subr.bf16.mxu0 %v1207_v5 }
  0x9e   : > { %1210 = vmatpush1.bf16.msra.mxu0 %v1209_v6 }
  0x9f   : > { %v464_v14 = vpop.permute.xlu1 %463  ;;  %v462_v15 = vpop.permute.xlu0 %461 }
  0xa0   : > { %v467_v19 = vsel %vm465_vm4, %v460_v63, %v464_v14  ;;  %v469_v20 = vsel %vm465_vm4, %v464_v14, %v460_v63  ;;  %v466_v21 = vsel %vm465_vm4, %v458_v4, %v462_v15  ;;  %v468_v22 = vsel %vm465_vm4, %v462_v15, %v458_v4 }
  0xa1   : > { %v480_v23 = vmul.f32 %v1549_v7, %v469_v20  ;;  %v481_v24 = vmul.f32 %v1552_v8, %v467_v19  ;;  %v478_v25 = vmul.f32 %v1549_v7, %v468_v22  ;;  %v479_v26 = vmul.f32 %v1552_v8, %v466_v21 }
  0xa2   : > { %v1613_v19 = vrot.slane %v1478_v12, %v563_v58  ;;  %v1616_v20 = vrot.slane %v1483_v13, %v563_v58 }
  0xa3   : > { %v493_v27 = vpop.permute.xlu1 %492  ;;  %v491_v28 = vpop.permute.xlu0 %490  ;;  %v1211_v29 = vpack.c.bf16 %v481_v24, %v479_v26  ;;  %v1213_v30 = vpack.c.bf16 %v480_v23, %v478_v25 }
  0xa5   : > { %1212 = vmatprep.subr.bf16.mxu0 %v1211_v29 }
  0xa6   : > { %1214 = vmatpush1.bf16.msra.mxu0 %v1213_v30 }
  0xa7   : > { %v497_v37 = vpop.permute.xlu1 %496  ;;  %v495_v38 = vpop.permute.xlu0 %494  ;;  %1216 = vmatprep.subr.bf16.mxu0 %v1215_v31 }
  0xa8   : > { %v500_v40 = vsel %vm498_vm5, %v493_v27, %v497_v37  ;;  %v502_v41 = vsel %vm498_vm5, %v497_v37, %v493_v27  ;;  %v499_v42 = vsel %vm498_vm5, %v491_v28, %v495_v38  ;;  %v501_v43 = vsel %vm498_vm5, %v495_v38, %v491_v28  ;;  %v1634_v37 = vld [vmem:[%s1932_s1 + $0x10] ss:$0 sm:$0xff]  ;;  %v1639_v38 = vld [vmem:[%s1932_s1 + $0x18] ss:$0 sm:$0xff] }
  0xa9   : > { %v513_v44 = vmul.f32 %v1571_v32, %v500_v40  ;;  %v514_v45 = vmul.f32 %v1574_v35, %v502_v41  ;;  %v511_v46 = vmul.f32 %v1571_v32, %v499_v42  ;;  %v512_v47 = vmul.f32 %v1574_v35, %v501_v43 }
  0xaa   : > { %1218 = vmatpush1.bf16.msra.mxu0 %v1217_v36 }
  0xab   : > { %v522_v48 = vpop.permute.xlu1 %521  ;;  %v520_v49 = vpop.permute.xlu0 %519  ;;  %v1219_v52 = vpack.c.bf16 %v514_v45, %v512_v47  ;;  %v1221_v53 = vpack.c.bf16 %v513_v44, %v511_v46 }
  0xad   : > { %1220 = vmatprep.subr.bf16.mxu0 %v1219_v52 }
  0xae   : > { %1222 = vmatpush1.bf16.msra.mxu0 %v1221_v53  ;;  %v606_v53 = vld [vmem:[%s1933_s2] sm:$0xff] }
  0xaf   : > { %v526_v56 = vpop.permute.xlu1 %525  ;;  %v524_v57 = vpop.permute.xlu0 %523 }
  0xb0   : > { %v529_v59 = vsel %vm527_vm6, %v522_v48, %v526_v56  ;;  %v531_v60 = vsel %vm527_vm6, %v526_v56, %v522_v48  ;;  %v528_v61 = vsel %vm527_vm6, %v520_v49, %v524_v57  ;;  %v530_v62 = vsel %vm527_vm6, %v524_v57, %v520_v49  ;;  %v609_v56 = vld [vmem:[%s1933_s2 + $0x18] sm:$0xff]  ;;  %v608_v57 = vld [vmem:[%s1933_s2 + $0x10] sm:$0xff] }
  0xb1   : > { %v542_v63 = vmul.f32 %v1593_v54, %v529_v59  ;;  %v543_v4 = vmul.f32 %v1596_v55, %v531_v60  ;;  %v540_v5 = vmul.f32 %v1593_v54, %v528_v61  ;;  %v541_v9 = vmul.f32 %v1596_v55, %v530_v62 }
  0xb3   : > { %v551_v6 = vpop.permute.xlu1 %550  ;;  %v549_v14 = vpop.permute.xlu0 %548  ;;  %v1223_v15 = vpack.c.bf16 %v543_v4, %v541_v9  ;;  %v1225_v18 = vpack.c.bf16 %v542_v63, %v540_v5 }
  0xb5   : > { %1224 = vmatprep.subr.bf16.mxu0 %v1223_v15 }
  0xb6   : > { %1226 = vmatpush1.bf16.msra.mxu0 %v1225_v18 }
  0xb7   : > { %v555_v21 = vpop.permute.xlu1 %554  ;;  %v553_v22 = vpop.permute.xlu0 %552 }
  0xb8   : > { %v558_v23 = vsel %vm556_vm7, %v551_v6, %v555_v21  ;;  %v560_v24 = vsel %vm556_vm7, %v555_v21, %v551_v6  ;;  %v557_v25 = vsel %vm556_vm7, %v549_v14, %v553_v22  ;;  %v559_v26 = vsel %vm556_vm7, %v553_v22, %v549_v14 }
  0xb9   : > { %v571_v12 = vmul.f32 %v1613_v19, %v558_v23  ;;  %v572_v13 = vmul.f32 %v1616_v20, %v560_v24  ;;  %v569_v27 = vmul.f32 %v1613_v19, %v557_v25  ;;  %v570_v28 = vmul.f32 %v1616_v20, %v559_v26  ;;  %v911_v24 = vld [vmem:[%s1935_s4 + $0x8] sm:$0xff]  ;;  %v950_v25 = vld [vmem:[%s1936_s5] sm:$0xff] }
  0xba   : > { %1191 = vmatprep.mubr.msk.f32.mxu1 %vm658_vm0, %v911_v24  ;;  %v951_v26 = vld [vmem:[%s1936_s5 + $0x8] sm:$0xff] }
  0xbb   : > { %v580_v29 = vpop.permute.xlu1 %579  ;;  %v578_v30 = vpop.permute.xlu0 %577  ;;  %v1227_v31 = vpack.c.bf16 %v572_v13, %v570_v28  ;;  %v1229_v36 = vpack.c.bf16 %v571_v12, %v569_v27 }
  0xbd   : > { %1228 = vmatprep.subr.bf16.mxu0 %v1227_v31 }
  0xbe   : > { %1230 = vmatpush1.bf16.msra.mxu0 %v1229_v36 }
  0xbf   : > { %v584_v39 = vpop.permute.xlu1 %583  ;;  %v582_v40 = vpop.permute.xlu0 %581 }
  0xc0   : > { %v587_v41 = vsel %vm585_vm8, %v580_v29, %v584_v39  ;;  %v589_v42 = vsel %vm585_vm8, %v584_v39, %v580_v29  ;;  %v586_v43 = vsel %vm585_vm8, %v578_v30, %v582_v40  ;;  %v588_v44 = vsel %vm585_vm8, %v582_v40, %v578_v30 }
  0xc1   : > { %v600_v45 = vmul.f32 %v1634_v37, %v587_v41  ;;  %v601_v46 = vmul.f32 %v1639_v38, %v589_v42  ;;  %v598_v47 = vmul.f32 %v1634_v37, %v586_v43  ;;  %v599_v48 = vmul.f32 %v1639_v38, %v588_v44 }
  0xc3   : > { %v1231_v49 = vpack.c.bf16 %v601_v46, %v599_v48  ;;  %v1233_v52 = vpack.c.bf16 %v600_v45, %v598_v47 }
  0xc5   : > { %1232 = vmatprep.subr.bf16.mxu0 %v1231_v49 }
  0xc6   : > { %1234 = vmatpush1.bf16.msra.mxu0 %v1233_v52 }
  0xc9   : > { %730 = vmatmul.mubr.f32.vlgmr.msra.gmra.mrb[0].mxu0 %v606_v53 }
  0xca   : > { %1190 = vmatprep.mubr.msk.f32.mxu0 %vm658_vm0, %v609_v56 }
  0xcd   : > { %736 = vmatmul.mubr.f32.gmra.mrb[2].mxu0 %v608_v57 }
  0xd0   : > { %v651_v58 = vpop.permute.xlu0 %650  ;;  %v656_v62 = vpop.permute.xlu1 %655 }
 0x19c   : > { %v731_v59 = vpop.f32.mrb[0].mxu0 }
 0x19d   : > { %v732_v60 = vadd.f32 %v731_v59, %v651_v58  ;;  %v733_v61 = vpop.f32.mrb[1].mxu0 }
 0x19e   : > { %v734_v4 = vadd.f32 %v733_v61, %v651_v58 }
 0x19f   : > { %v1663_v63 = vmax.f32 %v732_v60, 0.0 }
 0x1a0   : > { %v737_v5 = vpop.f32.mrb[2].mxu0  ;;  %v1669_v18 = vmax.f32 %v734_v4, 0.0 }
 0x1a1   : > { %v738_v9 = vadd.f32 %v737_v5, %v656_v62  ;;  %v739_v6 = vpop.f32.mrb[3].mxu0  ;;  %746 = vrot.lane.b32.xlu1 %v1663_v63, %s1306_s19 }
 0x1a2   : > { %v740_v14 = vadd.f32 %v739_v6, %v656_v62 }
 0x1a3   : > { %v1667_v15 = vmax.f32 %v738_v9, 0.0 }
 0x1a4   : > { %v1671_v21 = vmax.f32 %v740_v14, 0.0 }
 0x1a5   : > { %748 = vrot.lane.b32.xlu0 %v1667_v15, %s1306_s19  ;;  %766 = vrot.lane.b32.xlu1 %v1663_v63, %s1307_s20  ;;  %v1253_v22 = vpack.c.bf16 %v1667_v15, %v1663_v63 }
 0x1a6   : > { %v1251_v23 = vpack.c.bf16 %v1671_v21, %v1669_v18 }
 0x1a9   : > { %768 = vrot.lane.b32.xlu0 %v1667_v15, %s1307_s20  ;;  %786 = vrot.lane.b32.xlu1 %v1663_v63, %s1308_s21 }
 0x1ad   : > { %788 = vrot.lane.b32.xlu0 %v1667_v15, %s1308_s21  ;;  %806 = vrot.lane.b32.xlu1 %v1663_v63, %s1309_s22 }
 0x1b1   : > { %808 = vrot.lane.b32.xlu0 %v1667_v15, %s1309_s22  ;;  %830 = vrot.lane.b32.xlu1 %v1663_v63, %s1310_s23 }
 0x1b5   : > { %832 = vrot.lane.b32.xlu0 %v1667_v15, %s1310_s23  ;;  %850 = vrot.lane.b32.xlu1 %v1663_v63, %s1311_s24 }
 0x1b9   : > { %852 = vrot.lane.b32.xlu0 %v1667_v15, %s1311_s24  ;;  %870 = vrot.lane.b32.xlu1 %v1663_v63, %s1312_s25 }
 0x1bd   : > { %872 = vrot.lane.b32.xlu0 %v1667_v15, %s1312_s25  ;;  %750 = vrot.lane.b32.xlu1 %v1669_v18, %s1306_s19 }
 0x1c1   : > { %752 = vrot.lane.b32.xlu0 %v1671_v21, %s1306_s19  ;;  %770 = vrot.lane.b32.xlu1 %v1669_v18, %s1307_s20 }
 0x1c5   : > { %772 = vrot.lane.b32.xlu0 %v1671_v21, %s1307_s20  ;;  %790 = vrot.lane.b32.xlu1 %v1669_v18, %s1308_s21 }
 0x1c9   : > { %792 = vrot.lane.b32.xlu0 %v1671_v21, %s1308_s21  ;;  %810 = vrot.lane.b32.xlu1 %v1669_v18, %s1309_s22 }
 0x1cd   : > { %812 = vrot.lane.b32.xlu0 %v1671_v21, %s1309_s22  ;;  %890 = vrot.lane.b32.xlu1 %v1663_v63, %s1313_s28 }
 0x1d1   : > { %892 = vrot.lane.b32.xlu0 %v1667_v15, %s1313_s28  ;;  %834 = vrot.lane.b32.xlu1 %v1669_v18, %s1310_s23 }
 0x1d5   : > { %836 = vrot.lane.b32.xlu0 %v1671_v21, %s1310_s23  ;;  %854 = vrot.lane.b32.xlu1 %v1669_v18, %s1311_s24 }
 0x1d9   : > { %856 = vrot.lane.b32.xlu0 %v1671_v21, %s1311_s24  ;;  %874 = vrot.lane.b32.xlu1 %v1669_v18, %s1312_s25 }
 0x1dd   : > { %876 = vrot.lane.b32.xlu0 %v1671_v21, %s1312_s25  ;;  %894 = vrot.lane.b32.xlu1 %v1669_v18, %s1313_s28 }
 0x1e1   : > { %896 = vrot.lane.b32.xlu0 %v1671_v21, %s1313_s28  ;;  %954 = vperm.xlu1 %1289, %v950_v25  }
 0x1e5   : > { %959 = vperm.xlu0 %1288, %v951_v26  }
 0x213   : > { %v747_v12 = vpop.permute.xlu1 %746 }
 0x217   : > { %v749_v13 = vpop.permute.xlu0 %748  ;;  %v767_v27 = vpop.permute.xlu1 %766 }
 0x21b   : > { %v769_v28 = vpop.permute.xlu0 %768  ;;  %v787_v29 = vpop.permute.xlu1 %786 }
 0x21f   : > { %v789_v30 = vpop.permute.xlu0 %788  ;;  %v807_v31 = vpop.permute.xlu1 %806 }
 0x223   : > { %v809_v36 = vpop.permute.xlu0 %808  ;;  %v1749_v39 = vpop.permute.xlu1 %830 }
 0x227   : > { %v1751_v40 = vpop.permute.xlu0 %832  ;;  %v1753_v41 = vpop.permute.xlu1 %850 }
 0x22b   : > { %v1755_v42 = vpop.permute.xlu0 %852  ;;  %v1757_v43 = vpop.permute.xlu1 %870 }
 0x22f   : > { %v1759_v44 = vpop.permute.xlu0 %872  ;;  %v751_v45 = vpop.permute.xlu1 %750 }
 0x230   : > { %v754_v46 = vsel %vm378_vm1, %v747_v12, %v751_v45  ;;  %v756_v47 = vsel %vm378_vm1, %v751_v45, %v747_v12 }
 0x231   : > { %v758_v56 = vmul.f32 %v756_v47, %v1488_v16  ;;  %v759_v58 = vmul.f32 %v754_v46, %v1492_v17 }
 0x233   : > { %v753_v48 = vpop.permute.xlu0 %752  ;;  %v771_v49 = vpop.permute.xlu1 %770 }
 0x234   : > { %v755_v52 = vsel %vm378_vm1, %v749_v13, %v753_v48  ;;  %v757_v53 = vsel %vm378_vm1, %v753_v48, %v749_v13  ;;  %v774_v60 = vsel %vm407_vm2, %v767_v27, %v771_v49  ;;  %v776_v61 = vsel %vm407_vm2, %v771_v49, %v767_v27 }
 0x235   : > { %v760_v57 = vmul.f32 %v757_v53, %v1488_v16  ;;  %v761_v59 = vmul.f32 %v755_v52, %v1492_v17  ;;  %v778_v14 = vmul.f32 %v776_v61, %v1509_v33  ;;  %v779_v17 = vmul.f32 %v774_v60, %v1512_v34 }
 0x237   : > { %v773_v62 = vpop.permute.xlu0 %772  ;;  %v791_v4 = vpop.permute.xlu1 %790  ;;  %v1235_v5 = vpack.c.bf16 %v761_v59, %v759_v58  ;;  %v1237_v9 = vpack.c.bf16 %v760_v57, %v758_v56 }
 0x238   : > { %v775_v6 = vsel %vm407_vm2, %v769_v28, %v773_v62  ;;  %v777_v16 = vsel %vm407_vm2, %v773_v62, %v769_v28  ;;  %v794_v26 = vsel %vm436_vm3, %v787_v29, %v791_v4  ;;  %v796_v12 = vsel %vm436_vm3, %v791_v4, %v787_v29 }
 0x239   : > { %v780_v24 = vmul.f32 %v777_v16, %v1509_v33  ;;  %v781_v25 = vmul.f32 %v775_v6, %v1512_v34  ;;  %1236 = vmatprep.subr.bf16.mxu1 %v1235_v5  ;;  %v798_v34 = vmul.f32 %v796_v12, %v1529_v50  ;;  %v799_v47 = vmul.f32 %v794_v26, %v1532_v51 }
 0x23a   : > { %1238 = vmatpush1.bf16.msra.mxu1 %v1237_v9 }
 0x23b   : > { %v793_v13 = vpop.permute.xlu0 %792  ;;  %v811_v27 = vpop.permute.xlu1 %810  ;;  %v1239_v45 = vpack.c.bf16 %v781_v25, %v779_v17  ;;  %v1241_v28 = vpack.c.bf16 %v780_v24, %v778_v14 }
 0x23c   : > { %v795_v46 = vsel %vm436_vm3, %v789_v30, %v793_v13  ;;  %v797_v33 = vsel %vm436_vm3, %v793_v13, %v789_v30  ;;  %v814_v29 = vsel %vm465_vm4, %v807_v31, %v811_v27  ;;  %v816_v52 = vsel %vm465_vm4, %v811_v27, %v807_v31 }
 0x23d   : > { %v800_v48 = vmul.f32 %v797_v33, %v1529_v50  ;;  %v801_v49 = vmul.f32 %v795_v46, %v1532_v51  ;;  %1240 = vmatprep.subr.bf16.mxu1 %v1239_v45  ;;  %v818_v51 = vmul.f32 %v816_v52, %v1549_v7  ;;  %v819_v59 = vmul.f32 %v814_v29, %v1552_v8 }
 0x23e   : > { %1242 = vmatpush1.bf16.msra.mxu1 %v1241_v28 }
 0x23f   : > { %v813_v53 = vpop.permute.xlu0 %812  ;;  %v891_v56 = vpop.permute.xlu1 %890  ;;  %v1243_v57 = vpack.c.bf16 %v801_v49, %v799_v47  ;;  %v1245_v30 = vpack.c.bf16 %v800_v48, %v798_v34 }
 0x240   : > { %v815_v58 = vsel %vm465_vm4, %v809_v36, %v813_v53  ;;  %v817_v50 = vsel %vm465_vm4, %v813_v53, %v809_v36 }
 0x241   : > { %v820_v60 = vmul.f32 %v817_v50, %v1549_v7  ;;  %v821_v61 = vmul.f32 %v815_v58, %v1552_v8  ;;  %1244 = vmatprep.subr.bf16.mxu1 %v1243_v57  ;;  %v910_v50 = vld [vmem:[%s1935_s4] sm:$0xff] }
 0x242   : > { %1246 = vmatpush1.bf16.msra.mxu1 %v1245_v30 }
 0x243   : > { %v893_v31 = vpop.permute.xlu0 %892  ;;  %v835_v62 = vpop.permute.xlu1 %834  ;;  %v1247_v4 = vpack.c.bf16 %v821_v61, %v819_v59  ;;  %v1249_v5 = vpack.c.bf16 %v820_v60, %v818_v51 }
 0x244   : > { %v838_v9 = vsel %vm498_vm5, %v1749_v39, %v835_v62  ;;  %v840_v36 = vsel %vm498_vm5, %v835_v62, %v1749_v39 }
 0x245   : > { %1248 = vmatprep.subr.bf16.mxu1 %v1247_v4  ;;  %v842_v14 = vmul.f32 %v838_v9, %v1571_v32  ;;  %v843_v17 = vmul.f32 %v840_v36, %v1574_v35 }
 0x246   : > { %1250 = vmatpush1.bf16.msra.mxu1 %v1249_v5 }
 0x247   : > { %v837_v6 = vpop.permute.xlu0 %836  ;;  %1252 = vmatprep.subr.bf16.mxu1 %v1251_v23  ;;  %v855_v7 = vpop.permute.xlu1 %854 }
 0x248   : > { %v839_v8 = vsel %vm498_vm5, %v1751_v40, %v837_v6  ;;  %v841_v16 = vsel %vm498_vm5, %v837_v6, %v1751_v40  ;;  %v858_v18 = vsel %vm527_vm6, %v1753_v41, %v855_v7  ;;  %v860_v21 = vsel %vm527_vm6, %v855_v7, %v1753_v41 }
 0x249   : > { %v844_v39 = vmul.f32 %v839_v8, %v1571_v32  ;;  %v845_v24 = vmul.f32 %v841_v16, %v1574_v35  ;;  %v862_v12 = vmul.f32 %v858_v18, %v1593_v54  ;;  %v863_v41 = vmul.f32 %v860_v21, %v1596_v55  ;;  %v1054_v16 = vld [vmem:[%s1937_s6] sm:$0xff] }
 0x24a   : > { %1254 = vmatpush1.bf16.msra.mxu1 %v1253_v22 }
 0x24b   : > { %v857_v23 = vpop.permute.xlu0 %856  ;;  %v875_v40 = vpop.permute.xlu1 %874  ;;  %v1255_v25 = vpack.c.bf16 %v845_v24, %v843_v17  ;;  %v1257_v26 = vpack.c.bf16 %v844_v39, %v842_v14  ;;  %v1055_v14 = vld [vmem:[%s1937_s6 + $0x8] sm:$0xff] }
 0x24c   : > { %v859_v32 = vsel %vm527_vm6, %v1755_v42, %v857_v23  ;;  %v861_v35 = vsel %vm527_vm6, %v857_v23, %v1755_v42  ;;  %v878_v15 = vsel %vm556_vm7, %v1757_v43, %v875_v40  ;;  %v880_v22 = vsel %vm556_vm7, %v875_v40, %v1757_v43 }
 0x24d   : > { %v864_v13 = vmul.f32 %v859_v32, %v1593_v54  ;;  %v865_v63 = vmul.f32 %v861_v35, %v1596_v55  ;;  %1256 = vmatprep.subr.bf16.mxu1 %v1255_v25  ;;  %v882_v46 = vmul.f32 %v878_v15, %v1613_v19  ;;  %v883_v33 = vmul.f32 %v880_v22, %v1616_v20  ;;  %v1072_v22 = vld [vmem:[%s1939_s8 + $0x8] sm:$0xff] }
 0x24e   : > { %1258 = vmatpush1.bf16.msra.mxu1 %v1257_v26 }
 0x24f   : > { %v877_v27 = vpop.permute.xlu0 %876  ;;  %v895_v42 = vpop.permute.xlu1 %894  ;;  %v1259_v45 = vpack.c.bf16 %v865_v63, %v863_v41  ;;  %v1261_v28 = vpack.c.bf16 %v864_v13, %v862_v12  ;;  %v1068_v41 = vld [vmem:[%s1938_s7] sm:$0x1] }
 0x250   : > { %v879_v54 = vsel %vm556_vm7, %v1759_v44, %v877_v27  ;;  %v881_v55 = vsel %vm556_vm7, %v877_v27, %v1759_v44  ;;  %v898_v47 = vsel %vm585_vm8, %v891_v56, %v895_v42  ;;  %v900_v48 = vsel %vm585_vm8, %v895_v42, %v891_v56  ;;  %v1071_v27 = vld [vmem:[%s1939_s8] sm:$0xff] }
 0x251   : > { %v884_v34 = vmul.f32 %v879_v54, %v1613_v19  ;;  %v885_v43 = vmul.f32 %v881_v55, %v1616_v20  ;;  %1260 = vmatprep.subr.bf16.mxu1 %v1259_v45  ;;  %v902_v19 = vmul.f32 %v1634_v37, %v898_v47  ;;  %v903_v20 = vmul.f32 %v1639_v38, %v900_v48 }
 0x252   : > { %1262 = vmatpush1.bf16.msra.mxu1 %v1261_v28 }
 0x253   : > { %v897_v49 = vpop.permute.xlu0 %896  ;;  %v1263_v29 = vpack.c.bf16 %v885_v43, %v883_v33  ;;  %v1265_v52 = vpack.c.bf16 %v884_v34, %v882_v46  ;;  %v1086_v46 = vld [vmem:[%s1940_s9 + $0x8] sm:$0xff]  ;;  %v1085_v33 = vld [vmem:[%s1940_s9] sm:$0xff] }
 0x254   : > { %v899_v44 = vsel %vm585_vm8, %v893_v31, %v897_v49  ;;  %v901_v53 = vsel %vm585_vm8, %v897_v49, %v893_v31 }
 0x255   : > { %v904_v57 = vmul.f32 %v1634_v37, %v899_v44  ;;  %v905_v30 = vmul.f32 %v1639_v38, %v901_v53  ;;  %1264 = vmatprep.subr.bf16.mxu1 %v1263_v29  ;;  %v912_v37 = vld [vmem:[%s1935_s4 + $0x10] sm:$0xff] }
 0x256   : > { %1266 = vmatpush1.bf16.msra.mxu1 %v1265_v52 }
 0x257   : > { %v1267_v56 = vpack.c.bf16 %v905_v30, %v903_v20  ;;  %v1269_v58 = vpack.c.bf16 %v904_v57, %v902_v19 }
 0x259   : > { %1268 = vmatprep.subr.bf16.mxu1 %v1267_v56 }
 0x25a   : > { %1270 = vmatpush1.bf16.msra.mxu1 %v1269_v58 }
 0x25d   : > { %1033 = vmatmul.mubr.f32.vlgmr.msra.gmra.mrb[0].mxu1 %v910_v50 }
 0x25e   : > { %1192 = vmatprep.mubr.msk.f32.mxu1 %vm658_vm0, %v913_v10 }
 0x260   : > { %v955_v38 = vpop.permute.xlu1 %954 }
 0x261   : > { %1039 = vmatmul.mubr.f32.gmra.mrb[2].mxu1 %v912_v37 }
 0x264   : > { %v960_v31 = vpop.permute.xlu0 %959 }
 0x330   : > { %v1034_v51 = vpop.f32.mrb[0].mxu1 }
 0x331   : > { %v1885_v59 = vadd.f32 %v1034_v51, %v955_v38  ;;  %v1036_v60 = vpop.f32.mrb[1].mxu1 }
 0x332   : > { %v1887_v61 = vadd.f32 %v1036_v60, %v955_v38 }
 0x334   : > { %v1040_v62 = vpop.f32.mrb[2].mxu1  ;;  %v1045_v4 = vadd.f32 %v1887_v61, %v1885_v59 }
 0x335   : > { %v1041_v5 = vadd.f32 %v1040_v62, %v960_v31  ;;  %v1042_v9 = vpop.f32.mrb[3].mxu1 }
 0x336   : > { %v1043_v36 = vadd.f32 %v1042_v9, %v960_v31  ;;  %1046 = vadd.xlane.f32.xlu1 %v1045_v4 }
 0x338   : > { %v1048_v6 = vadd.f32 %v1043_v36, %v1041_v5 }
 0x33a   : > { %1049 = vadd.xlane.f32.xlu0 %v1048_v6 }
 0x3c3   : > { %v1047_v7 = vpop.xlane.xlu1 %1046 }
 0x3c4   : > { %v1052_v8 = vmul.f32 0.00390625, %v1047_v7 }
 0x3c6   : > { %v1056_v39 = vmul.f32 %v1054_v16, %v1052_v8 }
 0x3c7   : > { %v1050_v17 = vpop.xlane.xlu0 %1049 }
 0x3c8   : > { %v1053_v24 = vmul.f32 0.00390625, %v1050_v17  ;;  %v1059_v21 = vsel %vm1058_vm9, %v1056_v39, 0.0 }
 0x3ca   : > { %v1057_v18 = vmul.f32 %v1055_v14, %v1053_v24 }
 0x3cc   : > { %v1060_v23 = vsel %vm1058_vm9, %v1057_v18, 0.0 }
 0x3cd   : > { %v1061_v40 = vadd.f32 %v1060_v23, %v1059_v21 }
 0x3cf   : > { %v1062_v25 = vrot.slane %v1061_v40, 4 }
 0x3d1   : > { %v1063_v26 = vadd.f32 %v1062_v25, %v1061_v40 }
 0x3d3   : > { %v1064_v32 = vrot.slane %v1063_v26, 2 }
 0x3d5   : > { %v1065_v35 = vadd.f32 %v1064_v32, %v1063_v26 }
 0x3d7   : > { %v1066_v12 = vrot.slane %v1065_v35, 1 }
 0x3d9   : > { %v1067_v13 = vadd.f32 %v1066_v12, %v1065_v35 }
 0x3db   : > { %v1069_v63 = vadd.f32 %v1068_v41, %v1067_v13 }
 0x3dd   : > { %v1070_v15 = vmax.f32 %v1069_v63, 0.0 }
 0x3df   : > { %v1076_v42 = vrot.slane %v1070_v15, %v1473_v11 }
 0x3e1   : > { %v1078_v45 = vmul.f32 %v1076_v42, %v1072_v22  ;;  %v1077_v28 = vmul.f32 %v1076_v42, %v1071_v27 }
 0x3e3   : > { %v1082_v54 = vsel %vm1058_vm9, %v1078_v45, 0.0  ;;  %v1079_v55 = vsel %vm1058_vm9, %v1077_v28, 0.0 }
 0x3e4   : > { %1083 = vadd.xlane.f32.xlu1 %v1082_v54  ;;  %1080 = vadd.xlane.f32.xlu0 %v1079_v55 }
 0x471   : > { %v1084_v34 = vpop.xlane.xlu1 %1083  ;;  %v1081_v43 = vpop.xlane.xlu0 %1080 }
 0x472   : > { %v1088_v47 = vadd.f32 %v1086_v46, %v1084_v34  ;;  %v1087_v11 = vadd.f32 %v1085_v33, %v1081_v43 }
 0x474   : > { %v1194_v48 = vmul.f32 -1.442695, %v1088_v47  ;;  %v1193_v49 = vmul.f32 -1.442695, %v1087_v11 }
 0x476   : > { %1290 = vpow2.f32 %v1194_v48 }
 0x477   : > { %1292 = vpow2.f32 %v1193_v49 }
 0x480   : > { %v1291_v29 = vpop.eup %1290 }
 0x481   : > { %v1293_v52 = vpop.eup %1292  ;;  %v1096_v44 = vadd.f32 1.0, %v1291_v29 }
 0x482   : > { %v1095_v53 = vadd.f32 1.0, %v1293_v52 }
 0x483   : > { %1294 = vrcp.f32 %v1096_v44 }
 0x484   : > { %1296 = vrcp.f32 %v1095_v53 }
 0x48d   : > { %v1295_v19 = vpop.eup %1294 }
 0x48e   : > { %v1297_v20 = vpop.eup %1296  ;;  %1108 = vperm.xlu1 %1289, %v1295_v19  }
 0x48f   : > { %1103 = vperm.xlu0 %1288, %v1297_v20  }
 0x50d   : > { %v1109_v57 = vpop.permute.xlu1 %1108 }
 0x50e   : > { %v1113_v30 = vmul.f32 %v1109_v57, %v1041_v5  ;;  %v1114_v56 = vmul.f32 %v1109_v57, %v1043_v36  ;;  %v1104_v58 = vpop.permute.xlu0 %1103 }
 0x50f   : > { %v1111_v50 = vmul.f32 %v1104_v58, %v1885_v59  ;;  %v1112_v10 = vmul.f32 %v1104_v58, %v1887_v61 }
 0x510   : > { %v1117_v37 = vadd.f32 %v1113_v30, %v1396_v3  ;;  %v1118_v38 = vadd.f32 %v1114_v56, %v1394_v2 }
 0x511   : > { %v1115_v51 = vadd.f32 %v1111_v50, %v1388_v1  ;;  %v1116_v60 = vadd.f32 %v1112_v10, %v1386_v0 }
 0x512   : > { %1121 = vst [vmem:[%s359_s12 + $0x10] sm:$0xff] %v1117_v37  ;;  %1122 = vst [vmem:[%s359_s12 + $0x18] sm:$0xff] %v1118_v38 }
 0x513   : > { %1119 = vst [vmem:[%s359_s12] sm:$0xff] %v1115_v51  ;;  %1120 = vst [vmem:[%s359_s12 + $0x8] sm:$0xff] %v1116_v60 }
 0x514 PF: > { %s20_s13 = sadd.s32 1, %s1304_s13  }
 0x515   : > { %p17_p4 = scmp.ge.s32.totalorder %s20_s13, 4  }
 0x517   :  { %19 = sbr.rel (!%p17_p4) target bundleno = 1 (0x1), region = 90 }

</bundles_post_ra>
